<compile_context>
chip_gen: v6e
topology: v6e:2x2x1
jax: 0.10.0
libtpu: 0.0.40
codegen_flags: <defaults>
</compile_context>

<pallas_src>
import jax
import jax.numpy as jnp
from jax.experimental import pallas as pl
from jax.experimental.pallas import tpu as pltpu

_MATMUL_DTYPE = jnp.bfloat16  # MXU operand dtype; accumulation is always f32.


def _round_up(n, m):
    return ((n + m - 1) // m) * m


def _pack_rows(pieces, lane_width, dtype):
    """Pad each (r, c) piece to (round_up(r, 8), lane_width) with zeros and
    concatenate along rows. Returns (blob, per-piece starting row offsets)."""
    padded, offsets, off = [], [], 0
    for p in pieces:
        r, c = p.shape
        rp = _round_up(r, 8)
        buf = jnp.zeros((rp, lane_width), p.dtype).at[:r, :c].set(p)
        padded.append(buf)
        offsets.append(off)
        off += rp
    return jnp.concatenate(padded, axis=0).astype(dtype), tuple(offsets)


def _make_kernel(*, num_layers, clip_output, hidden_size, batch_size,
                 x_feat, y_feat, w_offs, b_offs):
    """Fused LSTM(seq_len=1, num_layers, h0=c0=0) + Linear (+clip) kernel."""
    H = hidden_size
    B = batch_size

    def _cell(gates):
        # gates: (B, >=3H) f32; gate order [i, g, o] in the first 3H lanes.
        # Full-tile transcendentals: 2 EUP passes + tanh(c); sigmoid(o) is
        # computed up front, off the c-dependency critical path.
        s = jax.nn.sigmoid(gates)
        t = jnp.tanh(gates)
        c = s[:, 0:H] * t[:, H:2 * H]
        return s[:, 2 * H:3 * H] * jnp.tanh(c)

    def kernel(x_ref, y_ref, w_ref, b_ref, out_ref):
        x_bf = x_ref[...].astype(_MATMUL_DTYPE)
        y_bf = y_ref[...].astype(_MATMUL_DTYPE)

        # Static, tile-aligned row slices into the packed blobs (free views).
        w0x = w_ref[w_offs[0]:w_offs[0] + x_feat, :]
        w0y = w_ref[w_offs[1]:w_offs[1] + y_feat, :]
        b0 = b_ref[b_offs[0]:b_offs[0] + B, :]

        # Layer 0: concat(x, y) folded in as two dots against split weights.
        # Keep (dot + dot) grouped before the bias add (v7x MRB accumulate).
        gates = (
            jnp.dot(x_bf, w0x, preferred_element_type=jnp.float32)
            + jnp.dot(y_bf, w0y, preferred_element_type=jnp.float32)
        ) + b0
        h = _cell(gates)

        # Remaining layers: one fused (H, 3H-padded) matmul each.
        for l in range(num_layers - 1):
            w = w_ref[w_offs[2 + l]:w_offs[2 + l] + H, :]
            b = b_ref[b_offs[1 + l]:b_offs[1 + l] + B, :]
            gates = jnp.dot(h.astype(_MATMUL_DTYPE), w,
                            preferred_element_type=jnp.float32) + b
            h = _cell(gates)

        # Final Linear (output lanes padded to 128 -> unmasked lane-dense store).
        wfc = w_ref[w_offs[-1]:w_offs[-1] + H, :]
        bfc = b_ref[b_offs[-1]:b_offs[-1] + B, :]
        y_out = jnp.dot(h.astype(_MATMUL_DTYPE), wfc,
                        preferred_element_type=jnp.float32) + bfc
        if clip_output:
            y_out = jnp.clip(y_out, -1.0, 1.0)
        out_ref[...] = y_out

    return kernel


def recovery_controller_forward(x, y, params, *, batch_size, out_size, clip_output):
    """Pallas implementation of RecoveryController.forward."""
    B = batch_size
    x2 = x.reshape(B, -1)
    y2 = y.reshape(B, -1)
    meta = params["meta"]

    kernel = _make_kernel(
        num_layers=meta["num_layers"], clip_output=clip_output,
        hidden_size=meta["hidden_size"], batch_size=B,
        x_feat=meta["x_feat"], y_feat=meta["y_feat"],
        w_offs=params["w_offs"], b_offs=params["b_offs"])

    out_padded = pl.pallas_call(
        kernel,
        out_shape=jax.ShapeDtypeStruct((B, meta["lane_width"]), jnp.float32),
        in_specs=[pl.BlockSpec(memory_space=pltpu.MemorySpace.VMEM)] * 4,
        out_specs=pl.BlockSpec(memory_space=pltpu.MemorySpace.VMEM),
    )(x2, y2, params["w_blob"], params["b_blob"])

    # Consumers that tolerate the 128-lane padded width can use out_padded
    # directly and skip this (tiny, but separate) slice op.
    return out_padded[:, :out_size]


def init_params(key, x_feat, y_feat, hidden_size, num_layers, out_size,
                batch_size, out_pad=128):
    """Synthetic params mirroring nn.LSTM / nn.Linear, pre-packed for the kernel.

    Packs every weight into one bf16 blob and every (B-row pre-broadcast) bias
    into one f32 blob; pieces are row-padded to multiples of 8 and lane-padded
    to multiples of 128 so the kernel can use free static slices."""
    H = hidden_size
    B = batch_size
    input_size = x_feat + y_feat
    raw = {}                       # torch-layout params for the pure-JAX reference
    w_pieces = []                  # order: w0x, w0y, w_1..w_{L-1}, wfc
    b_pieces = []                  # order: b0, b_1..b_{L-1}, bfc

    for l in range(num_layers):
        d_in = input_size if l == 0 else H
        key, k1, k2, k3, k4 = jax.random.split(key, 5)
        w_ih = jax.random.normal(k1, (4 * H, d_in), jnp.float32) * 0.1
        w_hh = jax.random.normal(k2, (4 * H, H), jnp.float32) * 0.1  # unused (h0 = 0)
        b_ih = jax.random.normal(k3, (4 * H,), jnp.float32) * 0.1
        b_hh = jax.random.normal(k4, (4 * H,), jnp.float32) * 0.1
        raw[l] = (w_ih, w_hh, b_ih, b_hh)

        # Kernel layout: fused (d_in, 3H), gate order [i, g, o]; f-gate dropped.
        rows = jnp.concatenate(
            [w_ih[0:H], w_ih[2 * H:3 * H], w_ih[3 * H:4 * H]], axis=0)  # (3H, d_in)
        w_k = rows.T                                                    # (d_in, 3H)
        b_sum = b_ih + b_hh
        b_k = jnp.concatenate(
            [b_sum[0:H], b_sum[2 * H:3 * H], b_sum[3 * H:4 * H]])       # (3H,)
        b_bcast = jnp.broadcast_to(b_k[None, :], (B, 3 * H))            # pre-broadcast

        if l == 0:
            w_pieces.append(w_k[:x_feat])   # (x_feat, 3H)
            w_pieces.append(w_k[x_feat:])   # (y_feat, 3H)
        else:
            w_pieces.append(w_k)            # (H, 3H)
        b_pieces.append(b_bcast)

    key, k1, k2 = jax.random.split(key, 3)
    w_fc = jax.random.normal(k1, (out_size, H), jnp.float32) * 0.1
    b_fc = jax.random.normal(k2, (out_size,), jnp.float32) * 0.1
    raw["fc"] = (w_fc, b_fc)

    # Lane-dense fc: pad output dim to out_pad (128) lanes with zeros.
    wfc = jnp.zeros((H, out_pad), jnp.float32).at[:, :out_size].set(w_fc.T)
    bfc = jnp.zeros((B, out_pad), jnp.float32).at[:, :out_size].set(
        jnp.broadcast_to(b_fc[None, :], (B, out_size)))
    w_pieces.append(wfc)
    b_pieces.append(bfc)

    lane_width = _round_up(max(3 * H, out_pad), 128)
    w_blob, w_offs = _pack_rows(w_pieces, lane_width, _MATMUL_DTYPE)
    b_blob, b_offs = _pack_rows(b_pieces, lane_width, jnp.float32)

    params = {
        "w_blob": w_blob, "b_blob": b_blob,
        "w_offs": w_offs, "b_offs": b_offs,
        "meta": dict(hidden_size=H, num_layers=num_layers,
                     x_feat=x_feat, y_feat=y_feat,
                     out_pad=out_pad, lane_width=lane_width),
    }
    return params, raw


def reference_forward(x, y, raw, *, batch_size, hidden_size, num_layers, clip_output):
    """Pure-JAX f32 reference matching PyTorch LSTM semantics (seq_len=1, zero state)."""
    B, H = batch_size, hidden_size
    h = jnp.concatenate([x.reshape(B, -1), y.reshape(B, -1)], axis=1)
    h_prev = jnp.zeros((B, H), jnp.float32)
    c_prev = jnp.zeros((B, H), jnp.float32)
    for l in range(num_layers):
        w_ih, w_hh, b_ih, b_hh = raw[l]
        gates = h @ w_ih.T + b_ih + h_prev @ w_hh.T + b_hh
        i_g, f_g, g_g, o_g = jnp.split(gates, 4, axis=1)
        c = jax.nn.sigmoid(f_g) * c_prev + jax.nn.sigmoid(i_g) * jnp.tanh(g_g)
        h = jax.nn.sigmoid(o_g) * jnp.tanh(c)
    w_fc, b_fc = raw["fc"]
    out = h @ w_fc.T + b_fc
    if clip_output:
        out = jnp.clip(out, -1.0, 1.0)
    return out


if __name__ == "__main__":
    # Small shapes consistent with the module's forward().
    batch_size = 8
    x_feat, y_feat = 6, 4
    hidden_size = 32
    num_layers = 2
    out_size = 4
    clip_output = True

    key = jax.random.PRNGKey(0)
    key, kx, ky, kp = jax.random.split(key, 4)
    x = jax.random.normal(kx, (batch_size, x_feat), jnp.float32)
    y = jax.random.normal(ky, (batch_size, y_feat), jnp.float32)

    params, raw = init_params(
        kp, x_feat, y_feat, hidden_size, num_layers, out_size, batch_size)

    out = recovery_controller_forward(
        x, y, params, batch_size=batch_size, out_size=out_size, clip_output=clip_output
    )
    out = jax.block_until_ready(out)

    ref = reference_forward(
        x, y, raw,
        batch_size=batch_size, hidden_size=hidden_size,
        num_layers=num_layers, clip_output=clip_output,
    )

    assert out.shape == (batch_size, out_size)
    max_err = jnp.max(jnp.abs(out - ref))
    # bf16 matmul operands (f32 accumulation) => relaxed tolerance vs f32 reference.
    assert jnp.allclose(out, ref, atol=2e-2, rtol=2e-2), f"mismatch: max abs err {max_err}"
    print("KERNEL_OK")
</pallas_src>

<mosaic_0001>
module attributes {stable_mosaic.version = 11 : i64} {
  func.func @kernel(%arg0: memref<8x6xf32, #tpu.memory_space<vmem>>, %arg1: memref<8x4xf32, #tpu.memory_space<vmem>>, %arg2: memref<80x128xbf16, #tpu.memory_space<vmem>>, %arg3: memref<24x128xf32, #tpu.memory_space<vmem>>, %arg4: memref<8x128xf32, #tpu.memory_space<vmem>>) attributes {dimension_semantics = [], scalar_prefetch = 0 : i64, scratch_operands = 0 : i64, tpu.core_type = #tpu.core_type<tc>} {
    %c0 = arith.constant 0 : index
    %c0_0 = arith.constant 0 : index
    %0 = vector.load %arg0[%c0, %c0_0] : memref<8x6xf32, #tpu.memory_space<vmem>>, vector<8x6xf32>
    %1 = arith.truncf %0 : vector<8x6xf32> to vector<8x6xbf16>
    %c0_1 = arith.constant 0 : index
    %c0_2 = arith.constant 0 : index
    %2 = vector.load %arg1[%c0_1, %c0_2] : memref<8x4xf32, #tpu.memory_space<vmem>>, vector<8x4xf32>
    %3 = arith.truncf %2 : vector<8x4xf32> to vector<8x4xbf16>
    %c0_3 = arith.constant 0 : index
    %c0_4 = arith.constant 0 : index
    %4 = vector.load %arg2[%c0_3, %c0_4] : memref<80x128xbf16, #tpu.memory_space<vmem>>, vector<6x128xbf16>
    %c8 = arith.constant 8 : index
    %c0_5 = arith.constant 0 : index
    %5 = vector.load %arg2[%c8, %c0_5] : memref<80x128xbf16, #tpu.memory_space<vmem>>, vector<4x128xbf16>
    %c0_6 = arith.constant 0 : index
    %c0_7 = arith.constant 0 : index
    %6 = vector.load %arg3[%c0_6, %c0_7] : memref<24x128xf32, #tpu.memory_space<vmem>>, vector<8x128xf32>
    %cst = arith.constant dense<0.000000e+00> : vector<8x128xf32>
    %7 = tpu.matmul %1, %4, %cst {dimension_numbers = #tpu.dot_dimension_numbers<[1], [0], [0], [1], [0, 0, 1, 1], [], []>} : vector<8x6xbf16>, vector<6x128xbf16>, vector<8x128xf32> -> vector<8x128xf32>
    %cst_8 = arith.constant dense<0.000000e+00> : vector<8x128xf32>
    %8 = tpu.matmul %3, %5, %cst_8 {dimension_numbers = #tpu.dot_dimension_numbers<[1], [0], [0], [1], [0, 0, 1, 1], [], []>} : vector<8x4xbf16>, vector<4x128xbf16>, vector<8x128xf32> -> vector<8x128xf32>
    %9 = arith.addf %7, %8 : vector<8x128xf32>
    %10 = arith.addf %9, %6 : vector<8x128xf32>
    %11 = arith.negf %10 : vector<8x128xf32>
    %12 = math.exp %11 : vector<8x128xf32>
    %cst_9 = arith.constant 1.000000e+00 : f32
    %13 = vector.broadcast %cst_9 : f32 to vector<8x128xf32>
    %14 = arith.addf %13, %12 : vector<8x128xf32>
    %15 = arith.divf %13, %14 : vector<8x128xf32>
    %16 = math.tanh %10 : vector<8x128xf32>
    %17 = vector.extract_strided_slice %15 {offsets = [0, 0], sizes = [8, 32], strides = [1, 1]} : vector<8x128xf32> to vector<8x32xf32>
    %18 = vector.extract_strided_slice %16 {offsets = [0, 32], sizes = [8, 32], strides = [1, 1]} : vector<8x128xf32> to vector<8x32xf32>
    %19 = arith.mulf %17, %18 : vector<8x32xf32>
    %20 = vector.extract_strided_slice %15 {offsets = [0, 64], sizes = [8, 32], strides = [1, 1]} : vector<8x128xf32> to vector<8x32xf32>
    %21 = math.tanh %19 : vector<8x32xf32>
    %22 = arith.mulf %20, %21 : vector<8x32xf32>
    %c16 = arith.constant 16 : index
    %c0_10 = arith.constant 0 : index
    %23 = vector.load %arg2[%c16, %c0_10] : memref<80x128xbf16, #tpu.memory_space<vmem>>, vector<32x128xbf16>
    %c8_11 = arith.constant 8 : index
    %c0_12 = arith.constant 0 : index
    %24 = vector.load %arg3[%c8_11, %c0_12] : memref<24x128xf32, #tpu.memory_space<vmem>>, vector<8x128xf32>
    %25 = arith.truncf %22 : vector<8x32xf32> to vector<8x32xbf16>
    %cst_13 = arith.constant dense<0.000000e+00> : vector<8x128xf32>
    %26 = tpu.matmul %25, %23, %cst_13 {dimension_numbers = #tpu.dot_dimension_numbers<[1], [0], [0], [1], [0, 0, 1, 1], [], []>} : vector<8x32xbf16>, vector<32x128xbf16>, vector<8x128xf32> -> vector<8x128xf32>
    %27 = arith.addf %26, %24 : vector<8x128xf32>
    %28 = arith.negf %27 : vector<8x128xf32>
    %29 = math.exp %28 : vector<8x128xf32>
    %cst_14 = arith.constant 1.000000e+00 : f32
    %30 = vector.broadcast %cst_14 : f32 to vector<8x128xf32>
    %31 = arith.addf %30, %29 : vector<8x128xf32>
    %32 = arith.divf %30, %31 : vector<8x128xf32>
    %33 = math.tanh %27 : vector<8x128xf32>
    %34 = vector.extract_strided_slice %32 {offsets = [0, 0], sizes = [8, 32], strides = [1, 1]} : vector<8x128xf32> to vector<8x32xf32>
    %35 = vector.extract_strided_slice %33 {offsets = [0, 32], sizes = [8, 32], strides = [1, 1]} : vector<8x128xf32> to vector<8x32xf32>
    %36 = arith.mulf %34, %35 : vector<8x32xf32>
    %37 = vector.extract_strided_slice %32 {offsets = [0, 64], sizes = [8, 32], strides = [1, 1]} : vector<8x128xf32> to vector<8x32xf32>
    %38 = math.tanh %36 : vector<8x32xf32>
    %39 = arith.mulf %37, %38 : vector<8x32xf32>
    %c48 = arith.constant 48 : index
    %c0_15 = arith.constant 0 : index
    %40 = vector.load %arg2[%c48, %c0_15] : memref<80x128xbf16, #tpu.memory_space<vmem>>, vector<32x128xbf16>
    %c16_16 = arith.constant 16 : index
    %c0_17 = arith.constant 0 : index
    %41 = vector.load %arg3[%c16_16, %c0_17] : memref<24x128xf32, #tpu.memory_space<vmem>>, vector<8x128xf32>
    %42 = arith.truncf %39 : vector<8x32xf32> to vector<8x32xbf16>
    %cst_18 = arith.constant dense<0.000000e+00> : vector<8x128xf32>
    %43 = tpu.matmul %42, %40, %cst_18 {dimension_numbers = #tpu.dot_dimension_numbers<[1], [0], [0], [1], [0, 0, 1, 1], [], []>} : vector<8x32xbf16>, vector<32x128xbf16>, vector<8x128xf32> -> vector<8x128xf32>
    %44 = arith.addf %43, %41 : vector<8x128xf32>
    %cst_19 = arith.constant -1.000000e+00 : f32
    %cst_20 = arith.constant 1.000000e+00 : f32
    %45 = vector.broadcast %cst_19 : f32 to vector<8x128xf32>
    %46 = arith.maximumf %45, %44 : vector<8x128xf32>
    %47 = vector.broadcast %cst_20 : f32 to vector<8x128xf32>
    %48 = arith.minimumf %47, %46 : vector<8x128xf32>
    %c0_21 = arith.constant 0 : index
    %c0_22 = arith.constant 0 : index
    %49 = vector.load %arg4[%c0_21, %c0_22] : memref<8x128xf32, #tpu.memory_space<vmem>>, vector<8x128xf32>
    tpu.vector_store %arg4[%c0_21, %c0_22], %48 {strides = array<i32>} : memref<8x128xf32, #tpu.memory_space<vmem>>, vector<8x128xf32>,
    return
  }
}

</mosaic_0001>

<bundles_post_ra>
// kernel: tpu_custom_call.1
= control target key start
LH: loop header
LB: loop body
LE: loop exit
PB: predicated region body
PF: predicated region fallthrough
CT: control target
= control target key end

     0   :  { %9 = vsyncpa [#allocation3], 0  ;;  %s554_s0 = inlined_call_operand.vmem [shape: f32[8,6], index: 0, kind: input, shape index: {}]   ;;  %s555_s1 = inlined_call_operand.vmem [shape: f32[8,4], index: 1, kind: input, shape index: {}]   ;;  %s556_s2 = inlined_call_operand.hbm [shape: bf16[80,128], index: 2, kind: input, shape index: {}]   ;;  %s557_s3 = inlined_call_operand.hbm [shape: f32[24,128], index: 3, kind: input, shape index: {}]   ;;  %s558_s4 = inlined_call_operand.hbm [shape: f32[8,128], index: 4, kind: output, shape index: {}]  }
   0x1   :  { %10 = vsyncpa [#allocation6], 0 }
   0x2   :  { %11 = vsyncpa [#allocation4], 0  ;;  %s480_s15 = smov [#allocation2]  }
   0x3   :  { %s21_s16 = sshll.u32 %s480_s15, 4  ;;  %s22_s16 = int_to_ptr.vmem [resolvable:$true] %s21_s16 }
   0x4   :  { %s422_s17 = scalar_lea.vmem %s22_s16, 640  ;;  %p427_p1 = scmp.lt.s32.totalorder %s22_s16, %s22_s16 }
   0x5   :  { %p423_p0 = scmp.ne.s32.totalorder %s22_s16, %s422_s17  ;;  %p428_p2 = scmp.lt.s32.totalorder %s422_s17, %s422_s17 }
   0x7   :  { %p429_p3 = por %p428_p2, %p427_p1 }
   0x9   :  { %p430_p4 = pnand %p429_p3, %p423_p0 }
   0xb   :  { %433 = shalt.err (!%p430_p4)
}
   0xc   :  { %s481_s18 = smov 64   ;;  %s482_s19 = smov 4  }
   0xd   :  { %27 = dma.hbm_to_vmem [thread:$0]  %s556_s2, 640, %s22_s16, [#allocation3], %s481_s18, %s481_s18, %s482_s19  }
   0xe   :  { %s483_s22 = smov [#allocation5]  }
   0xf   :  { %s33_s23 = sshll.u32 %s483_s22, 4  ;;  %s34_s23 = int_to_ptr.vmem [resolvable:$true] %s33_s23 }
  0x10   :  { %s442_s24 = scalar_lea.vmem %s34_s23, 384  ;;  %p447_p6 = scmp.lt.s32.totalorder %s34_s23, %s34_s23 }
  0x11   :  { %p443_p5 = scmp.ne.s32.totalorder %s34_s23, %s442_s24  ;;  %p448_p7 = scmp.lt.s32.totalorder %s442_s24, %s442_s24 }
  0x13   :  { %p449_p8 = por %p448_p7, %p447_p6 }
  0x15   :  { %p450_p9 = pnand %p449_p8, %p443_p5 }
  0x17   :  { %453 = shalt.err (!%p450_p9)
}
  0x18   :  { %s484_s25 = smov 128   ;;  %s485_s26 = smov 8  }
  0x19   :  { %39 = dma.hbm_to_vmem [thread:$0]  %s557_s3, 384, %s34_s23, [#allocation6], %s484_s25, %s484_s25, %s485_s26  }
  0x1a   :  { %474 = dma.done.wait [#allocation3], 640  }
  0x1b   :  { %475 = vsyncadd [#allocation3], 4294966656 }
  0x1c   :  { %476 = dma.done.wait [#allocation6], 384  }
  0x1d   :  { %477 = vsyncadd [#allocation6], 4294966912  ;;  %v486_v0 = vmov 0.0   ;;  %vm487_vm0 = vmmov 0   ;;  %vm58_vm1 = vcmask 1041408   ;;  %vm106_vm2 = vcmask 1042432  }
  0x1e   :  { %356 = vmatprep.subr.bf16.mxu0 %v486_v0  ;;  %362 = vmatprep.subr.bf16.mxu1 %v486_v0  ;;  %v52_v1 = vld [vmem:[#allocation2 + $0x4] sm:$0x3]  ;;  %v51_v2 = vld [vmem:[#allocation2] sm:$0x7]  ;;  %vm54_vm3 = vcmask 31744   ;;  %vm102_vm4 = vcmask 48128  }
  0x1f   :  { %358 = vmatprep.mubr.msk.bf16.mxu0 %vm487_vm0, %v486_v0  ;;  %364 = vmatprep.mubr.msk.bf16.mxu1 %vm487_vm0, %v486_v0  ;;  %v49_v3 = vld [vmem:[%s555_s1] sm:$0xff]  ;;  %v60_v4 = vsel %vm58_vm1, %v52_v1, 0  ;;  %v108_v5 = vsel %vm106_vm2, %v51_v2, 0  ;;  %v53_v10 = vld [vmem:[#allocation5] sm:$0xff]  ;;  %v394_v27 = vld [vmem:[#allocation2 + $0x10] sm:$0xff]   ;;  %vm190_vm5 = vcmask 261120  }
  0x20   :  { %v50_v6 = vpack.c.bf16 %v49_v3, %v49_v3  ;;  %v47_v7 = vld [vmem:[%s554_s0] sm:$0xff]  ;;  %357 = vmatpush3.bf16.msra.mxu0 %v60_v4  ;;  %363 = vmatpush3.bf16.msra.mxu1 %v108_v5  ;;  %s488_s0 = smov 96   ;;  %v395_v28 = vld [vmem:[#allocation2 + $0x8] sm:$0xff]   ;;  %v173_v34 = vld [vmem:[#allocation5 + $0x8] sm:$0xff]  ;;  %s489_s1 = smov [#allocation7]  }
  0x21   :  { %v48_v8 = vpack.c.bf16 %v47_v7, %v47_v7  ;;  %368 = vmatprep.subr.bf16.mxu0 %v486_v0  ;;  %376 = vmatprep.subr.bf16.mxu1 %v486_v0  ;;  %v396_v47 = vld [vmem:[#allocation2 + $0x20] sm:$0xff]   ;;  %v397_v48 = vld [vmem:[#allocation2 + $0x18] sm:$0xff]   ;;  %s325_s5 = sshll.u32 %s489_s1, 4  ;;  %s326_s5 = int_to_ptr.vmem [resolvable:$true] %s325_s5 }
  0x22   :  { %v256_v54 = vld [vmem:[#allocation5 + $0x10] sm:$0xff]  ;;  %s454_s6 = scalar_lea.vmem %s326_s5, 128  ;;  %p459_p11 = scmp.lt.s32.totalorder %s326_s5, %s326_s5 }
  0x23   :  { %359 = vmatmul.mubr.msk.bf16.vlgmr.msra.gmra.mxu0 %vm54_vm3, %v50_v6  ;;  %365 = vmatmul.mubr.msk.bf16.vlgmr.msra.gmra.mxu1 %vm102_vm4, %v48_v8  ;;  %p455_p10 = scmp.ne.s32.totalorder %s326_s5, %s454_s6  ;;  %p460_p12 = scmp.lt.s32.totalorder %s454_s6, %s454_s6 }
  0x24   :  { %372 = vmatprep.mubr.msk.bf16.mxu0 %vm487_vm0, %v486_v0  ;;  %380 = vmatprep.mubr.msk.bf16.mxu1 %vm487_vm0, %v486_v0 }
  0x25   :  { %369 = vmatpush3.bf16.msra.mxu0 %v394_v27  ;;  %377 = vmatpush3.bf16.msra.mxu1 %v396_v47  ;;  %p461_p13 = por %p460_p12, %p459_p11 }
  0x26   :  { %370 = vmatprep.subr.bf16.mxu0 %v486_v0  ;;  %378 = vmatprep.subr.bf16.mxu1 %v486_v0 }
  0x27   :  { %p462_p0 = pnand %p461_p13, %p455_p10 }
  0x29   :  { %371 = vmatpush3.bf16.msra.mxu0 %v395_v28  ;;  %379 = vmatpush3.bf16.msra.mxu1 %v397_v48 }
  0xe3   :  { %v96_v9 = vpop.f32.mrf.mxu0  ;;  %v144_v11 = vpop.f32.mrf.mxu1 }
  0xe4   :  { %v145_v12 = vadd.f32 %v144_v11, %v96_v9 }
  0xe5   :  { %v360_v13 = vpop.f32.mrf.mxu0  ;;  %v366_v14 = vpop.f32.mrf.mxu1 }
  0xe6   :  { %v150_v15 = vadd.f32 %v145_v12, %v53_v10 }
  0xe7   :  { %v99_v16 = vpop.f32.mrf.mxu0  ;;  %v147_v17 = vpop.f32.mrf.mxu1 }
  0xe8   :  { %398 = vtanh.f32 %v150_v15  ;;  %v337_v21 = vmul.f32 -1.442695, %v150_v15 }
  0xe9   :  { %v361_v18 = vpop.f32.mrf.mxu0  ;;  %v367_v19 = vpop.f32.mrf.mxu1 }
  0xea   :  { %400 = vpow2.f32 %v337_v21 }
  0xf5   :  { %v399_v20 = vpop.eup %398 }
  0xf6   :  { %159 = vrot.lane.b32.xlu0 %v399_v20, %s488_s0 }
  0xf7   :  { %v401_v22 = vpop.eup %400 }
  0xf8   :  { %v154_v23 = vadd.f32 1.0, %v401_v22 }
  0xfa   :  { %402 = vrcp.f32 %v154_v23 }
 0x107   :  { %v403_v24 = vpop.eup %402 }
 0x168   :  { %v160_v25 = vpop.permute.xlu0 %159 }
 0x169   :  { %v162_v26 = vmul.f32 %v403_v24, %v160_v25 }
 0x16b   :  { %404 = vtanh.f32 %v162_v26 }
 0x178   :  { %v405_v29 = vpop.eup %404 }
 0x179   :  { %165 = vrot.lane.b32.xlu0 %v405_v29, %s481_s18 }
 0x1eb   :  { %v166_v30 = vpop.permute.xlu0 %165 }
 0x1ec   :  { %v168_v31 = vmul.f32 %v403_v24, %v166_v30 }
 0x1ee   :  { %v174_v32 = vpack.c.bf16 %v168_v31, %v168_v31 }
 0x1f0   :  { %176 = vrot.lane.b32.xlu1 %v174_v32, %s481_s18 }
 0x262   :  { %v177_v33 = vpop.permute.xlu1 %176 }
 0x263   :  { %373 = vmatmul.mubr.msk.bf16.vlgmr.msra.gmra.mxu0 %vm190_vm5, %v177_v33 }
 0x323   :  { %v228_v35 = vpop.f32.mrf.mxu0 }
 0x324   :  { %v229_v36 = vadd.f32 %v228_v35, %v173_v34 }
 0x325   :  { %v374_v37 = vpop.f32.mrf.mxu0 }
 0x326   :  { %406 = vtanh.f32 %v229_v36  ;;  %v341_v41 = vmul.f32 -1.442695, %v229_v36 }
 0x327   :  { %v231_v38 = vpop.f32.mrf.mxu0 }
 0x328   :  { %408 = vpow2.f32 %v341_v41 }
 0x329   :  { %v375_v39 = vpop.f32.mrf.mxu0 }
 0x333   :  { %v407_v40 = vpop.eup %406 }
 0x334   :  { %242 = vrot.lane.b32.xlu1 %v407_v40, %s488_s0 }
 0x335   :  { %v409_v42 = vpop.eup %408 }
 0x336   :  { %v237_v43 = vadd.f32 1.0, %v409_v42 }
 0x338   :  { %410 = vrcp.f32 %v237_v43 }
 0x345   :  { %v411_v44 = vpop.eup %410 }
 0x3a6   :  { %v243_v45 = vpop.permute.xlu1 %242 }
 0x3a7   :  { %v245_v46 = vmul.f32 %v411_v44, %v243_v45 }
 0x3a9   :  { %412 = vtanh.f32 %v245_v46 }
 0x3b6   :  { %v413_v49 = vpop.eup %412 }
 0x3b7   :  { %248 = vrot.lane.b32.xlu0 %v413_v49, %s481_s18 }
 0x429   :  { %v249_v50 = vpop.permute.xlu0 %248 }
 0x42a   :  { %v251_v51 = vmul.f32 %v411_v44, %v249_v50 }
 0x42c   :  { %v257_v52 = vpack.c.bf16 %v251_v51, %v251_v51 }
 0x42e   :  { %259 = vrot.lane.b32.xlu1 %v257_v52, %s481_s18 }
 0x4a0   :  { %v260_v53 = vpop.permute.xlu1 %259 }
 0x4a1   :  { %381 = vmatmul.mubr.msk.bf16.vlgmr.msra.gmra.mxu1 %vm190_vm5, %v260_v53 }
 0x561   :  { %v310_v55 = vpop.f32.mrf.mxu1 }
 0x562   :  { %v311_v56 = vadd.f32 %v310_v55, %v256_v54 }
 0x563   :  { %v382_v57 = vpop.f32.mrf.mxu1 }
 0x564   :  { %v345_v58 = vclamps-f32 %v311_v56, 1.0 }
 0x565   :  { %v313_v59 = vpop.f32.mrf.mxu1 }
 0x566   :  { %318 = vst [vmem:[#allocation7] sm:$0xff] %v345_v58 }
 0x567   :  { %v383_v60 = vpop.f32.mrf.mxu1 }
 0x568   :  { %465 = shalt.err (!%p462_p0)
}
 0x569   :  { %328 = dma.vmem_to_hbm [thread:$0]  %s326_s5, 128, %s558_s4, [#allocation4]  }
 0x56a   :  { %478 = dma.done.wait [#allocation4], 128  }
 0x56b   :  { %479 = vsyncadd [#allocation4], 4294967168 }
 0x56c   :  { %332 = vsyncpa [#allocation3], 1 }
 0x56d   :  { %333 = vsyncpa [#allocation6], 1 }
 0x56e   :  { %334 = vsyncpa [#allocation4], 1 }

</bundles_post_ra>
